<compile_context>
chip_gen: v7x
topology: tpu7x:2x2x1
jax: 0.10.0
libtpu: 0.0.40
codegen_flags: <defaults>
</compile_context>

<pallas_src>
import functools

import jax
import jax.numpy as jnp
from jax.experimental import pallas as pl
from jax.experimental.pallas import tpu as pltpu


def _focal_ce_kernel(n_valid_ref, logits_ref, labels_ref, out_ref, *,
                     gama, logit, tile_n):
    i = pl.program_id(0)
    n_valid = n_valid_ref[0]                             # SMEM scalar
    logits = logits_ref[...].astype(jnp.float32)         # (tile_n, C)
    labels = labels_ref[...]                              # (tile_n, 1) int32
    tn, c = logits.shape

    # Gather the label column via a select (no gather/scatter on TPU; cheaper
    # than a one-hot float multiply: no int->f32 cast, no extra (tn, C) temp).
    col_ids = jax.lax.broadcasted_iota(jnp.int32, (tn, c), 1)
    z_y = jnp.sum(jnp.where(col_ids == labels, logits, 0.0),
                  axis=1, keepdims=True)                  # (tile_n, 1)

    if logit:
        # Numerically stable log-softmax at the label: logp = z_y - m - lse.
        m = jnp.max(logits, axis=1, keepdims=True)
        lse = jnp.log(jnp.sum(jnp.exp(logits - m), axis=1, keepdims=True))
        logp = z_y - m - lse
        p = jnp.exp(logp)
    else:
        # Inputs are already probabilities.
        p = z_y
        logp = jnp.log(p)

    q = 1.0 - p
    if isinstance(gama, int) and gama >= 0:
        # Integer power as repeated multiply (cheap VPU work, (tile_n,1) shaped).
        focal_w = jnp.ones_like(q)
        for _ in range(gama):
            focal_w = focal_w * q
    else:
        focal_w = q ** gama     # non-integer gama: lowers to exp/log on the EUP

    focal = -focal_w * logp                               # (tile_n, 1)

    # Mask out-of-range rows of the ragged last tile (select, not arithmetic
    # masking, so garbage rows producing NaN/inf never reach the sum).
    row_ids = i * tile_n + jax.lax.broadcasted_iota(jnp.int32, (tn, 1), 0)
    focal = jnp.where(row_ids < n_valid, focal, 0.0)

    # Per-tile partial sum, written as a full (8,128)-aligned slab (unmasked
    # store; the wrapper reads element [i, 0, 0] of each tile's slab).
    partial = jnp.sum(focal, axis=0, keepdims=True)       # (1, 1)
    out_ref[...] = jnp.broadcast_to(partial.reshape(1, 1, 1), (1, 8, 128))


def focal_cross_entropy_loss(y_pre, y, gama=2, logit=True, tile_n=None):
    """Pallas TPU implementation of FocalCrossEntropyLoss.forward."""
    n, c = y_pre.shape
    itemsize = jnp.dtype(y_pre.dtype).itemsize
    # Sublane packing: 8 rows for 4-byte dtypes, 16 for 2-byte, 32 for 1-byte.
    sublane = max(8, 32 // itemsize)

    def _round_up(v, m):
        return -(-v // m) * m

    if tile_n is None:
        # Real VMEM footprint per grid step:
        #   2 * tile_n * C * itemsize   (double-buffered input DMA)
        # + ~4 * tile_n * C * 4         (f32 upcast / iota / exp / select temps)
        # Target ~12 MiB so we stay well inside the 32 MiB scoped limit on
        # every generation (v7x physical VMEM is 64 MiB).
        budget = 12 * 1024 * 1024
        bytes_per_row = c * (2 * itemsize + 16)
        tile_n = budget // max(bytes_per_row, 1)
        tile_n = max(sublane, min(4096, (tile_n // sublane) * sublane))
    else:
        # Align user-supplied tile_n to the sublane packing so the BlockSpec
        # always satisfies the (8,128) divisibility rule.
        tile_n = max(sublane, _round_up(tile_n, sublane))
    # Never tile beyond the (sublane-rounded) problem size.
    tile_n = min(tile_n, _round_up(max(n, 1), sublane))

    num_tiles = pl.cdiv(n, tile_n)
    labels2d = y.astype(jnp.int32).reshape(n, 1)
    n_valid = jnp.asarray([n], dtype=jnp.int32)

    kernel = functools.partial(
        _focal_ce_kernel, gama=gama, logit=logit, tile_n=tile_n)

    partials = pl.pallas_call(
        kernel,
        out_shape=jax.ShapeDtypeStruct((num_tiles, 8, 128), jnp.float32),
        grid_spec=pltpu.PrefetchScalarGridSpec(
            num_scalar_prefetch=1,           # n_valid -> SMEM scalar
            grid=(num_tiles,),
            in_specs=[
                pl.BlockSpec((tile_n, c), lambda i, n_ref: (i, 0)),  # logits
                pl.BlockSpec((tile_n, 1), lambda i, n_ref: (i, 0)),  # labels
            ],
            out_specs=pl.BlockSpec((1, 8, 128), lambda i, n_ref: (i, 0, 0)),
        ),
        compiler_params=pltpu.CompilerParams(
            dimension_semantics=("parallel",),
            vmem_limit_bytes=32 * 1024 * 1024),
        cost_estimate=pl.CostEstimate(
            flops=6 * n * c,
            transcendentals=n * c,
            bytes_accessed=n * c * itemsize + n * 4
                           + num_tiles * 8 * 128 * 4),
    )(n_valid, y_pre, labels2d)

    # Tiny final reduction over the per-tile partial sums (num_tiles scalars).
    return jnp.sum(partials[:, 0, 0])


def _reference_loss(y_pre, y, gama=2, logit=True):
    """Pure-JAX reference mirroring the PyTorch forward."""
    if logit:
        y_pre = jax.nn.softmax(y_pre, axis=1)
    p = y_pre[jnp.arange(y.shape[0]), y]
    return -jnp.sum((1.0 - p) ** gama * jnp.log(p))


if __name__ == "__main__":
    key = jax.random.PRNGKey(0)
    k1, k2, k3, k4 = jax.random.split(key, 4)

    # Small shapes consistent with a classifier head.
    N, C = 8, 16
    y_pre = jax.random.normal(k1, (N, C), dtype=jnp.float32)
    y = jax.random.randint(k2, (N,), 0, C, dtype=jnp.int32)

    loss = focal_cross_entropy_loss(y_pre, y, gama=2, logit=True)
    loss = jax.block_until_ready(loss)
    ref = _reference_loss(y_pre, y, gama=2, logit=True)
    assert jnp.allclose(loss, ref, rtol=1e-5, atol=1e-5), (loss, ref)

    # Exercise the ragged-tile path (N not a multiple of tile_n, no padding of
    # the logits in the wrapper).
    N2, C2 = 37, 24
    y_pre2 = jax.random.normal(k3, (N2, C2), dtype=jnp.float32)
    y2 = jax.random.randint(k4, (N2,), 0, C2, dtype=jnp.int32)
    loss2 = focal_cross_entropy_loss(y_pre2, y2, gama=2, logit=True, tile_n=16)
    loss2 = jax.block_until_ready(loss2)
    ref2 = _reference_loss(y_pre2, y2, gama=2, logit=True)
    assert jnp.allclose(loss2, ref2, rtol=1e-5, atol=1e-5), (loss2, ref2)

    # logit=False path (inputs already probabilities).
    probs = jax.nn.softmax(y_pre2, axis=1)
    loss3 = focal_cross_entropy_loss(probs, y2, gama=2, logit=False, tile_n=16)
    loss3 = jax.block_until_ready(loss3)
    ref3 = _reference_loss(probs, y2, gama=2, logit=False)
    assert jnp.allclose(loss3, ref3, rtol=1e-5, atol=1e-5), (loss3, ref3)

    print("KERNEL_OK")
</pallas_src>

<mosaic_0001>
module attributes {stable_mosaic.version = 11 : i64} {
  func.func @_focal_ce_kernel(%arg0: i32, %arg1: memref<1xi32, #tpu.memory_space<smem>>, %arg2: memref<8x16xf32, #tpu.memory_space<vmem>>, %arg3: memref<8x1xi32, #tpu.memory_space<vmem>>, %arg4: memref<1x8x128xf32, #tpu.memory_space<vmem>>) attributes {dimension_semantics = [#tpu.dimension_semantics<parallel>], iteration_bounds = array<i64: 1>, scalar_prefetch = 1 : i64, scratch_operands = 0 : i64, tpu.core_type = #tpu.core_type<tc>, window_params = [{transform_indices = @transform_0, window_bounds = array<i64: 8, 16>}, {transform_indices = @transform_1, window_bounds = array<i64: 8, 1>}, {transform_indices = @transform_2, window_bounds = array<i64: 1, 8, 128>}]} {
    %c0 = arith.constant 0 : index
    %0 = memref.load %arg1[%c0] : memref<1xi32, #tpu.memory_space<smem>>
    %c0_0 = arith.constant 0 : index
    %c0_1 = arith.constant 0 : index
    %1 = vector.load %arg2[%c0_0, %c0_1] : memref<8x16xf32, #tpu.memory_space<vmem>>, vector<8x16xf32>
    %c0_2 = arith.constant 0 : index
    %c0_3 = arith.constant 0 : index
    %2 = vector.load %arg3[%c0_2, %c0_3] : memref<8x1xi32, #tpu.memory_space<vmem>>, vector<8x1xi32>
    %3 = tpu.iota {dimensions = array<i32: 1>} : vector<8x16xi32>
    %4 = vector.broadcast %2 : vector<8x1xi32> to vector<8x16xi32>
    %5 = arith.cmpi eq, %3, %4 : vector<8x16xi32>
    %cst = arith.constant 0.000000e+00 : f32
    %6 = vector.broadcast %cst : f32 to vector<8x16xf32>
    %7 = arith.select %5, %1, %6 : vector<8x16xi1>, vector<8x16xf32>
    %cst_4 = arith.constant dense<0.000000e+00> : vector<8xf32>
    %8 = vector.multi_reduction <add>, %7, %cst_4 [1] : vector<8x16xf32> to vector<8xf32>
    %9 = vector.shape_cast %8 : vector<8xf32> to vector<8x1xf32>
    %cst_5 = arith.constant dense<0xFF800000> : vector<8xf32>
    %10 = vector.multi_reduction <maximumf>, %1, %cst_5 [1] : vector<8x16xf32> to vector<8xf32>
    %11 = vector.shape_cast %10 : vector<8xf32> to vector<8x1xf32>
    %12 = vector.broadcast %11 : vector<8x1xf32> to vector<8x16xf32>
    %13 = arith.subf %1, %12 : vector<8x16xf32>
    %14 = math.exp %13 : vector<8x16xf32>
    %cst_6 = arith.constant dense<0.000000e+00> : vector<8xf32>
    %15 = vector.multi_reduction <add>, %14, %cst_6 [1] : vector<8x16xf32> to vector<8xf32>
    %16 = vector.shape_cast %15 : vector<8xf32> to vector<8x1xf32>
    %17 = math.log %16 : vector<8x1xf32>
    %18 = arith.subf %9, %11 : vector<8x1xf32>
    %19 = arith.subf %18, %17 : vector<8x1xf32>
    %20 = math.exp %19 : vector<8x1xf32>
    %cst_7 = arith.constant 1.000000e+00 : f32
    %21 = vector.broadcast %cst_7 : f32 to vector<8x1xf32>
    %22 = arith.subf %21, %20 : vector<8x1xf32>
    %cst_8 = arith.constant 1.000000e+00 : f32
    %23 = vector.broadcast %cst_8 : f32 to vector<8x1xf32>
    %24 = arith.mulf %23, %22 : vector<8x1xf32>
    %25 = arith.mulf %24, %22 : vector<8x1xf32>
    %cst_9 = arith.constant 0.000000e+00 : f32
    %26 = vector.broadcast %cst_9 : f32 to vector<8x1xf32>
    %27 = arith.subf %26, %25 : vector<8x1xf32>
    %28 = arith.mulf %27, %19 : vector<8x1xf32>
    %c8_i32 = arith.constant 8 : i32
    %29 = arith.muli %arg0, %c8_i32 : i32
    %30 = tpu.iota {dimensions = array<i32: 0>} : vector<8x1xi32>
    %31 = vector.broadcast %29 : i32 to vector<8x1xi32>
    %32 = arith.addi %31, %30 : vector<8x1xi32>
    %33 = vector.broadcast %0 : i32 to vector<8x1xi32>
    %34 = arith.cmpi slt, %32, %33 : vector<8x1xi32>
    %cst_10 = arith.constant 0.000000e+00 : f32
    %35 = vector.broadcast %cst_10 : f32 to vector<8x1xf32>
    %36 = arith.select %34, %28, %35 : vector<8x1xi1>, vector<8x1xf32>
    %cst_11 = arith.constant dense<0.000000e+00> : vector<1xf32>
    %37 = vector.multi_reduction <add>, %36, %cst_11 [0] : vector<8x1xf32> to vector<1xf32>
    %38 = vector.shape_cast %37 : vector<1xf32> to vector<1x1xf32>
    %39 = vector.shape_cast %38 : vector<1x1xf32> to vector<1x1x1xf32>
    %40 = vector.shape_cast %39 : vector<1x1x1xf32> to vector<1x1x1xf32>
    %41 = vector.broadcast %40 : vector<1x1x1xf32> to vector<1x8x128xf32>
    %c0_12 = arith.constant 0 : index
    %c0_13 = arith.constant 0 : index
    %c0_14 = arith.constant 0 : index
    %42 = vector.load %arg4[%c0_12, %c0_13, %c0_14] : memref<1x8x128xf32, #tpu.memory_space<vmem>>, vector<1x8x128xf32>
    tpu.vector_store %arg4[%c0_12, %c0_13, %c0_14], %41 {strides = array<i32>} : memref<1x8x128xf32, #tpu.memory_space<vmem>>, vector<1x8x128xf32>,
    return
  }
  func.func @transform_0(%arg0: i32, %arg1: memref<1xi32, #tpu.memory_space<smem>>) -> (i32, i32) {
    %c0_i32 = arith.constant 0 : i32
    %c0_i32_0 = arith.constant 0 : i32
    return %arg0, %c0_i32 : i32, i32
  }
  func.func @transform_1(%arg0: i32, %arg1: memref<1xi32, #tpu.memory_space<smem>>) -> (i32, i32) {
    %c0_i32 = arith.constant 0 : i32
    %c0_i32_0 = arith.constant 0 : i32
    return %arg0, %c0_i32 : i32, i32
  }
  func.func @transform_2(%arg0: i32, %arg1: memref<1xi32, #tpu.memory_space<smem>>) -> (i32, i32, i32) {
    %c0_i32 = arith.constant 0 : i32
    %c0_i32_0 = arith.constant 0 : i32
    %c0_i32_1 = arith.constant 0 : i32
    return %arg0, %c0_i32, %c0_i32_0 : i32, i32, i32
  }
}

</mosaic_0001>

<bundles_post_ra>
// kernel: tpu_custom_call.1
= control target key start
LH: loop header
LB: loop body
LE: loop exit
PB: predicated region body
PF: predicated region fallthrough
CT: control target
= control target key end

     0   :  { %vm24_vm0 = vcmask 130048   ;;  %s155_s0 = inlined_call_operand.<no memory space> [shape: s32[1], index: 0, kind: input, shape index: {}]   ;;  %s156_s1 = inlined_call_operand.vmem [shape: f32[8,16], index: 1, kind: input, shape index: {}]   ;;  %s157_s2 = inlined_call_operand.vmem [shape: s32[8,1], index: 2, kind: input, shape index: {}]   ;;  %s158_s3 = inlined_call_operand.hbm [shape: f32[1,8,128], index: 3, kind: output, shape index: {}]  }
   0x1   :  { %v15_v0 = vld [vmem:[%s156_s1] sm:$0xff] }
   0x2   :  { %9 = vsyncpa [#allocation5], 0  ;;  %v28_v1 = vsel %vm24_vm0, %v15_v0, -inf  ;;  %v109_v2 = vmov 0   ;;  %v16_v3 = vld [vmem:[%s157_s2] sm:$0xff]  ;;  %v17_v7 = vlaneseq  ;;  %v52_v24 = vstv %s155_s0  ;;  %s110_s16 = smov [#allocation4]  }
   0x3   :  { %78 = vset.pattern.permute.xlu0 %v109_v2  ;;  %s68_s17 = sshll.u32 %s110_s16, 4  ;;  %s69_s17 = int_to_ptr.vmem [resolvable:$true] %s68_s17 }
   0x4   :  { %29 = vmax.xlane.f32.xlu0 %v28_v1  ;;  %v18_v8 = vand.u32 127, %v17_v7  ;;  %v49_v23 = vshrl.u32 %v17_v7, 7  ;;  %s85_s18 = scalar_lea.vmem %s69_s17, 128  ;;  %p90_p1 = scmp.lt.s32.totalorder %s69_s17, %s69_s17 }
   0x5   :  { %p86_p0 = scmp.ne.s32.totalorder %s69_s17, %s85_s18  ;;  %p91_p2 = scmp.lt.s32.totalorder %s85_s18, %s85_s18 }
   0x6   :  { %vm53_vm2 = vcmp.lt.s32.totalorder %v49_v23, %v52_v24 }
   0x7   :  { %p92_p3 = por %p91_p2, %p90_p1 }
   0x9   :  { %p93_p4 = pnand %p92_p3, %p86_p0 }
  0x1a   :  { %20 = vperm.xlu0 %78, %v16_v3  }
  0x91   :  { %v30_v4 = vpop.xlane.xlu0 %29 }
  0x92   :  { %v31_v5 = vsub.f32 %v15_v0, %v30_v4 }
  0x94   :  { %v32_v6 = vmul.f32 1.442695, %v31_v5 }
  0x96   :  { %79 = vpow2.f32 %v32_v6 }
  0x99   :  { %v21_v9 = vpop.permute.xlu0 %20 }
  0x9a   :  { %vm22_vm1 = vcmp.eq.s32.totalorder %v18_v8, %v21_v9 }
  0x9b   :  { %v23_v11 = vsel %vm22_vm1, %v15_v0, 0.0 }
  0x9c   :  { %v25_v13 = vsel %vm24_vm0, %v23_v11, 0.0 }
  0xa0   :  { %v80_v10 = vpop.eup %79 }
  0xa1   :  { %v34_v12 = vsel %vm24_vm0, %v80_v10, 0.0 }
  0xa2   :  { %35 = vadd.xlane.f32.xlu1 %v34_v12 }
  0xa6   :  { %26 = vadd.xlane.f32.xlu1 %v25_v13 }
 0x12f   :  { %v36_v14 = vpop.xlane.xlu1 %35 }
 0x130   :  { %81 = vlog2.f32 %v36_v14 }
 0x133   :  { %v27_v15 = vpop.xlane.xlu1 %26 }
 0x134   :  { %v39_v18 = vsub.f32 %v27_v15, %v30_v4 }
 0x13a   :  { %v82_v16 = vpop.eup %81 }
 0x13b   :  { %v38_v17 = vmul.f32 0.6931472, %v82_v16 }
 0x13d   :  { %v40_v19 = vsub.f32 %v39_v18, %v38_v17 }
 0x13f   :  { %v41_v20 = vmul.f32 1.442695, %v40_v19 }
 0x141   :  { %83 = vpow2.f32 %v41_v20 }
 0x14b   :  { %v84_v21 = vpop.eup %83 }
 0x14c   :  { %v43_v22 = vsub.f32 1.0, %v84_v21 }
 0x14e   :  { %v44_v25 = vmul.f32 %v43_v22, %v43_v22 }
 0x150   :  { %v45_v26 = vsub.f32 0.0, %v44_v25 }
 0x152   :  { %v46_v27 = vmul.f32 %v45_v26, %v40_v19 }
 0x154   :  { %v54_v28 = vsel %vm53_vm2, %v46_v27, 0.0 }
 0x155   :  { %v55_v29 = vrot.slane %v54_v28, 4 }
 0x157   :  { %v56_v30 = vadd.f32 %v55_v29, %v54_v28 }
 0x159   :  { %v57_v31 = vrot.slane %v56_v30, 2 }
 0x15b   :  { %v58_v32 = vadd.f32 %v57_v31, %v56_v30 }
 0x15d   :  { %v59_v33 = vrot.slane %v58_v32, 1 }
 0x15f   :  { %v60_v34 = vadd.f32 %v59_v33, %v58_v32 }
 0x161   :  { %61 = vst [vmem:[#allocation4] sm:$0xff] %v60_v34 }
 0x162   :  { %96 = shalt.err (!%p93_p4)
}
 0x163   :  { %s97_s20 = scalar_lea.hbm %s158_s3, 128 }
 0x164   :  { %p98_p5 = scmp.ne.s32.totalorder %s158_s3, %s97_s20  ;;  %p101_p6 = scmp.lt.u32.totalorder %s97_s20, %s158_s3 }
 0x166   :  { %p103_p7 = pnand %p101_p6, %p98_p5 }
 0x168   :  { %106 = shalt.err (!%p103_p7)
}
 0x169   :  { %71 = dma.vmem_to_hbm [thread:$0]  %s69_s17, 128, %s158_s3, [#allocation5]  }
 0x16a   :  { %107 = dma.done.wait [#allocation5], 128  }
 0x16b   :  { %108 = vsyncadd [#allocation5], 4294967168 }
 0x16c   :  { %75 = vsyncpa [#allocation5], 1 }

</bundles_post_ra>
